<compile_context>
chip_gen: v5e
topology: v5e:2x2
jax: 0.10.0
libtpu: 0.0.40
codegen_flags: <defaults>
</compile_context>

<pallas_src>
import jax
import jax.numpy as jnp
from jax import lax
from jax.experimental import pallas as pl
from jax.experimental.pallas import tpu as pltpu

LANES = 128
MAX_TILE_ROWS = 1024   # (1024, 128) f32 block = 512 KiB per input per buffer
NCORES = 2             # split the reduction for v7x's 2 TCs; harmless on 1-TC chips


def _round_up(x, m):
    return ((x + m - 1) // m) * m


def _make_kernel(weight_zero, weight_non_zero, rows_valid, tile_rows, blocks_per_core):
    def kernel(x_ref, t_ref, out_ref):
        c = pl.program_id(0)   # parallel (core) axis
        i = pl.program_id(1)   # reduction axis

        @pl.when(i == 0)
        def _():
            out_ref[...] = jnp.zeros_like(out_ref)

        x = x_ref[...].astype(jnp.float32)
        t = t_ref[...].astype(jnp.float32)
        diff = jnp.abs(x - t)
        w = jnp.where(t == 0.0, jnp.float32(weight_zero), jnp.float32(weight_non_zero))
        contrib = diff * w

        # Mask rows past the logical end of the data (partial tail block, or a
        # replayed block when the index_map clamped an over-the-end block id).
        # The select zeroes the whole contribution, so garbage (even NaN/Inf)
        # in the unread part of the tile cannot leak into the sum.
        g = c * blocks_per_core + i                  # logical (unclamped) block id
        row0 = g * tile_rows
        row_ids = row0 + lax.broadcasted_iota(jnp.int32, (tile_rows, LANES), 0)
        contrib = jnp.where(row_ids < rows_valid, contrib, 0.0)

        # Per-lane partial sums: reduce only across sublane groups (pure VPU),
        # accumulate into a lane-dense (8, 128) block; the one cross-lane
        # reduction happens in the wrapper.
        out_ref[...] += contrib.reshape(-1, 8, LANES).sum(axis=0)

    return kernel


def weighted_l1_loss(inputs, targets, weight_zero=0.5, weight_non_zero=1.5):
    assert inputs.shape == targets.shape
    n_elems = int(inputs.size)

    x = inputs.reshape(-1)
    t = targets.reshape(-1)

    # Only pad to the next lane multiple (<=127 elements) so we can form a
    # (rows, 128) slab; padded positions have x == t == 0 -> contribute 0.
    # TODO(synk): when n % 128 != 0 this still materializes a copy of the flat
    # arrays; unavoidable here and rare in practice.
    pad = (-n_elems) % LANES
    if pad:
        x = jnp.pad(x, (0, pad))
        t = jnp.pad(t, (0, pad))

    rows = x.size // LANES
    x2 = x.reshape(rows, LANES)
    t2 = t.reshape(rows, LANES)

    tile_rows = min(MAX_TILE_ROWS, _round_up(rows, 8))  # multiple of 8 sublanes
    num_blocks = pl.cdiv(rows, tile_rows)
    ncores = min(NCORES, num_blocks)
    blocks_per_core = pl.cdiv(num_blocks, ncores)

    def in_map(c, i):
        # Clamp so no block DMA starts past the end of the array; clamped
        # (replayed) blocks are fully masked out in-kernel via their logical id.
        return (jnp.minimum(c * blocks_per_core + i, num_blocks - 1), 0)

    kernel = _make_kernel(weight_zero, weight_non_zero, rows, tile_rows, blocks_per_core)

    itemsize = jnp.dtype(inputs.dtype).itemsize
    cost = pl.CostEstimate(
        flops=6 * n_elems,
        transcendentals=0,
        bytes_accessed=2 * rows * LANES * itemsize + ncores * 8 * LANES * 4,
    )

    partials = pl.pallas_call(
        kernel,
        out_shape=jax.ShapeDtypeStruct((ncores * 8, LANES), jnp.float32),
        grid_spec=pltpu.PrefetchScalarGridSpec(
            num_scalar_prefetch=0,
            grid=(ncores, blocks_per_core),
            in_specs=[
                pl.BlockSpec((tile_rows, LANES), in_map),
                pl.BlockSpec((tile_rows, LANES), in_map),
            ],
            out_specs=pl.BlockSpec((8, LANES), lambda c, i: (c, 0)),
        ),
        compiler_params=pltpu.CompilerParams(
            dimension_semantics=("parallel", "arbitrary")),
        cost_estimate=cost,
    )(x2, t2)

    total = jnp.sum(partials)                 # tiny cross-lane reduce in XLA
    return total / jnp.float32(n_elems)


def _reference(inputs, targets, weight_zero=0.5, weight_non_zero=1.5):
    x = inputs.astype(jnp.float32)
    t = targets.astype(jnp.float32)
    diff = jnp.abs(x - t)
    mask_zero = (t == 0).astype(jnp.float32)
    mask_non_zero = (t != 0).astype(jnp.float32)
    loss = weight_zero * diff * mask_zero + weight_non_zero * diff * mask_non_zero
    return loss.mean()


if __name__ == "__main__":
    key = jax.random.PRNGKey(0)
    k1, k2, k3 = jax.random.split(key, 3)

    # NCHW, small shapes
    shape = (2, 4, 16, 16)
    inputs = jax.random.normal(k1, shape, dtype=jnp.float32)
    targets = jax.random.normal(k2, shape, dtype=jnp.float32)
    # Make a good fraction of targets exactly zero so both branches are exercised.
    zero_mask = jax.random.bernoulli(k3, p=0.4, shape=shape)
    targets = jnp.where(zero_mask, 0.0, targets)

    loss = weighted_l1_loss(inputs, targets)
    loss = jax.block_until_ready(loss)

    ref = _reference(inputs, targets)
    assert jnp.allclose(loss, ref, rtol=1e-5, atol=1e-6), (loss, ref)

    print("KERNEL_OK")
</pallas_src>

<mosaic_0001>
module attributes {stable_mosaic.version = 11 : i64} {
  func.func @kernel(%arg0: i32, %arg1: i32, %arg2: memref<16x128xf32, #tpu.memory_space<vmem>>, %arg3: memref<16x128xf32, #tpu.memory_space<vmem>>, %arg4: memref<8x128xf32, #tpu.memory_space<vmem>>) attributes {dimension_semantics = [#tpu.dimension_semantics<parallel>, #tpu.dimension_semantics<arbitrary>], iteration_bounds = array<i64: 1, 1>, scalar_prefetch = 0 : i64, scratch_operands = 0 : i64, tpu.core_type = #tpu.core_type<tc>, window_params = [{transform_indices = @transform_0, window_bounds = array<i64: 16, 128>}, {transform_indices = @transform_1, window_bounds = array<i64: 16, 128>}, {transform_indices = @transform_2, window_bounds = array<i64: 8, 128>}]} {
    %c0_i32 = arith.constant 0 : i32
    %0 = arith.cmpi eq, %arg1, %c0_i32 : i32
    %1 = arith.extui %0 : i1 to i32
    %c0_i32_0 = arith.constant 0 : i32
    %2 = arith.cmpi ne, %1, %c0_i32_0 : i32
    scf.if %2 {
      %cst_13 = arith.constant 0.000000e+00 : f32
      %28 = vector.broadcast %cst_13 : f32 to vector<8x128xf32>
      %c0_14 = arith.constant 0 : index
      %c0_15 = arith.constant 0 : index
      %29 = vector.load %arg4[%c0_14, %c0_15] : memref<8x128xf32, #tpu.memory_space<vmem>>, vector<8x128xf32>
      tpu.vector_store %arg4[%c0_14, %c0_15], %28 {strides = array<i32>} : memref<8x128xf32, #tpu.memory_space<vmem>>, vector<8x128xf32>,
    } else {
    }
    %c0 = arith.constant 0 : index
    %c0_1 = arith.constant 0 : index
    %3 = vector.load %arg2[%c0, %c0_1] : memref<16x128xf32, #tpu.memory_space<vmem>>, vector<16x128xf32>
    %c0_2 = arith.constant 0 : index
    %c0_3 = arith.constant 0 : index
    %4 = vector.load %arg3[%c0_2, %c0_3] : memref<16x128xf32, #tpu.memory_space<vmem>>, vector<16x128xf32>
    %5 = arith.subf %3, %4 : vector<16x128xf32>
    %6 = math.absf %5 : vector<16x128xf32>
    %cst = arith.constant 0.000000e+00 : f32
    %7 = vector.broadcast %cst : f32 to vector<16x128xf32>
    %8 = arith.cmpf oeq, %4, %7 : vector<16x128xf32>
    %cst_4 = arith.constant 5.000000e-01 : f32
    %cst_5 = arith.constant 1.500000e+00 : f32
    %9 = vector.broadcast %cst_4 : f32 to vector<16x128xf32>
    %10 = vector.broadcast %cst_5 : f32 to vector<16x128xf32>
    %11 = arith.select %8, %9, %10 : vector<16x128xi1>, vector<16x128xf32>
    %12 = arith.mulf %6, %11 : vector<16x128xf32>
    %c1_i32 = arith.constant 1 : i32
    %13 = arith.muli %arg0, %c1_i32 : i32
    %14 = arith.addi %13, %arg1 : i32
    %c16_i32 = arith.constant 16 : i32
    %15 = arith.muli %14, %c16_i32 : i32
    %16 = tpu.iota {dimensions = array<i32: 0>} : vector<16x128xi32>
    %17 = vector.broadcast %15 : i32 to vector<16x128xi32>
    %18 = arith.addi %17, %16 : vector<16x128xi32>
    %c16_i32_6 = arith.constant 16 : i32
    %19 = vector.broadcast %c16_i32_6 : i32 to vector<16x128xi32>
    %20 = arith.cmpi slt, %18, %19 : vector<16x128xi32>
    %cst_7 = arith.constant 0.000000e+00 : f32
    %21 = vector.broadcast %cst_7 : f32 to vector<16x128xf32>
    %22 = arith.select %20, %12, %21 : vector<16x128xi1>, vector<16x128xf32>
    %c0_8 = arith.constant 0 : index
    %c0_9 = arith.constant 0 : index
    %23 = vector.load %arg4[%c0_8, %c0_9] : memref<8x128xf32, #tpu.memory_space<vmem>>, vector<8x128xf32>
    %24 = vector.shape_cast %22 : vector<16x128xf32> to vector<2x8x128xf32>
    %cst_10 = arith.constant dense<0.000000e+00> : vector<8x128xf32>
    %25 = vector.multi_reduction <add>, %24, %cst_10 [0] : vector<2x8x128xf32> to vector<8x128xf32>
    %26 = arith.addf %23, %25 : vector<8x128xf32>
    %c0_11 = arith.constant 0 : index
    %c0_12 = arith.constant 0 : index
    %27 = vector.load %arg4[%c0_11, %c0_12] : memref<8x128xf32, #tpu.memory_space<vmem>>, vector<8x128xf32>
    tpu.vector_store %arg4[%c0_11, %c0_12], %26 {strides = array<i32>} : memref<8x128xf32, #tpu.memory_space<vmem>>, vector<8x128xf32>,
    return
  }
  func.func @transform_0(%arg0: i32, %arg1: i32) -> (i32, i32) {
    %c1_i32 = arith.constant 1 : i32
    %0 = arith.muli %arg0, %c1_i32 : i32
    %1 = arith.addi %0, %arg1 : i32
    %c0_i32 = arith.constant 0 : i32
    %2 = arith.minsi %1, %c0_i32 : i32
    %c0_i32_0 = arith.constant 0 : i32
    %c0_i32_1 = arith.constant 0 : i32
    return %2, %c0_i32_0 : i32, i32
  }
  func.func @transform_1(%arg0: i32, %arg1: i32) -> (i32, i32) {
    %c1_i32 = arith.constant 1 : i32
    %0 = arith.muli %arg0, %c1_i32 : i32
    %1 = arith.addi %0, %arg1 : i32
    %c0_i32 = arith.constant 0 : i32
    %2 = arith.minsi %1, %c0_i32 : i32
    %c0_i32_0 = arith.constant 0 : i32
    %c0_i32_1 = arith.constant 0 : i32
    return %2, %c0_i32_0 : i32, i32
  }
  func.func @transform_2(%arg0: i32, %arg1: i32) -> (i32, i32) {
    %c0_i32 = arith.constant 0 : i32
    %c0_i32_0 = arith.constant 0 : i32
    return %arg0, %c0_i32 : i32, i32
  }
}

</mosaic_0001>

<bundles_post_ra>
// kernel: tpu_custom_call.1
= control target key start
LH: loop header
LB: loop body
LE: loop exit
PB: predicated region body
PF: predicated region fallthrough
CT: control target
= control target key end

     0   :  { %7 = vsyncpa [#allocation3], 0  ;;  %s236_s0 = inlined_call_operand.hbm [shape: f32[16,128], index: 0, kind: input, shape index: {}]   ;;  %s237_s1 = inlined_call_operand.hbm [shape: f32[16,128], index: 1, kind: input, shape index: {}]   ;;  %s238_s2 = inlined_call_operand.hbm [shape: f32[8,128], index: 2, kind: output, shape index: {}]  }
   0x1   :  { %8 = vsyncpa [#allocation6], 0 }
   0x2   :  { %9 = vsyncpa [#allocation4], 0  ;;  %s20_s11 = sshll.u32 %s236_s0, 4  ;;  %s206_s12 = smov [#allocation2]   ;;  %s21_s11 = int_to_ptr.hbm [resolvable:$true] %s20_s11 }
   0x3   :  { %s22_s13 = sshll.u32 %s206_s12, 4  ;;  %s39_s16 = sshll.u32 %s237_s1, 4  ;;  %s23_s13 = int_to_ptr.vmem [resolvable:$true] %s22_s13  ;;  %s40_s16 = int_to_ptr.hbm [resolvable:$true] %s39_s16 }
   0x4   :  { %s207_s17 = smov 128   ;;  %s208_s18 = smov 8  }
   0x5   :  { %28 = dma.hbm_to_vmem [thread:$0]  %s21_s11, 256, %s23_s13, [#allocation3], %s207_s17, %s207_s17, %s208_s18  }
   0x6   :  { %s209_s19 = smov [#allocation5]  }
   0x7   :  { %s41_s20 = sshll.u32 %s209_s19, 4  ;;  %s42_s20 = int_to_ptr.vmem [resolvable:$true] %s41_s20 }
   0x8   :  { %47 = dma.hbm_to_vmem [thread:$0]  %s40_s16, 256, %s42_s20, [#allocation6], %s207_s17, %s207_s17, %s208_s18  }
   0x9   :  { %200 = dma.done.wait [#allocation3], 256  }
   0xa   :  { %201 = vsyncadd [#allocation3], 4294967040 }
   0xb   :  { %202 = dma.done.wait [#allocation6], 256  }
   0xc   :  { %203 = vsyncadd [#allocation6], 4294967040  ;;  %v69_v0 = vld [vmem:[#allocation2] sm:$0xff]  ;;  %v70_v1 = vld [vmem:[#allocation2 + $0x8] sm:$0xff]  ;;  %v210_v6 = vmov 1.5   ;;  %s211_s0 = smov [#allocation7]  }
   0xd   :  { %v71_v2 = vld [vmem:[#allocation5] sm:$0xff]  ;;  %v72_v3 = vld [vmem:[#allocation5 + $0x8] sm:$0xff]  ;;  %s104_s1 = sshll.u32 %s211_s0, 4  ;;  %s106_s23 = sshll.u32 %s238_s2, 4  ;;  %s105_s1 = int_to_ptr.vmem [resolvable:$true] %s104_s1  ;;  %s107_s23 = int_to_ptr.hbm [resolvable:$true] %s106_s23 }
   0xe   :  { %v73_v4 = vsub.f32 %v69_v0, %v71_v2  ;;  %vm77_vm0 = vcmp.eq.f32.partialorder %v71_v2, 0.0  ;;  %v74_v5 = vsub.f32 %v70_v1, %v72_v3  ;;  %vm78_vm1 = vcmp.eq.f32.partialorder %v72_v3, 0.0 }
   0xf   :  { %v79_v7 = vsel %vm77_vm0, 0.5, %v210_v6  ;;  %v80_v9 = vsel %vm78_vm1, 0.5, %v210_v6 }
  0x10   :  { %v75_v8 = vand.u32 2147483647, %v73_v4  ;;  %v76_v10 = vand.u32 2147483647, %v74_v5 }
  0x12   :  { %v81_v11 = vmul.f32 %v79_v7, %v75_v8  ;;  %v82_v12 = vmul.f32 %v80_v9, %v76_v10 }
  0x14   :  { %v96_v13 = vadd.f32 %v82_v12, %v81_v11 }
  0x16   :  { %98 = vst [vmem:[#allocation7] sm:$0xff] %v96_v13 }
  0x17   :  { %109 = dma.vmem_to_hbm [thread:$0]  %s105_s1, 128, %s107_s23, [#allocation4]  }
  0x18   :  { %204 = dma.done.wait [#allocation4], 128  }
  0x19   :  { %205 = vsyncadd [#allocation4], 4294967168 }
  0x1a   :  { %114 = vsyncpa [#allocation3], 1 }
  0x1b   :  { %115 = vsyncpa [#allocation6], 1 }
  0x1c   :  { %116 = vsyncpa [#allocation4], 1 }

</bundles_post_ra>
